<compile_context>
chip_gen: v7x
topology: tpu7x:2x2x1
jax: 0.10.0
libtpu: 0.0.40
codegen_flags: <defaults>
</compile_context>

<pallas_src>
import functools

import jax
import jax.numpy as jnp
from jax.experimental import pallas as pl
from jax.experimental.pallas import tpu as pltpu


def _recip(x):
    # EUP approximate reciprocal + one Newton-Raphson step: keeps the divide
    # off the VALU slot while restoring ~f32 accuracy.
    r = pl.reciprocal(x, approx=True)
    return r * (2.0 - x * r)


def _ln_folded_kernel(x_ref, seg_ref, segt_ref, gamma_ref, beta_ref, o_ref, *,
                      eps, n_features):
    """LayerNorm with G = 128 // D rows folded into one lane-dense 128-wide row.

    x_ref:     (T, G*D)  activations, G*D == 128 (lane-dense)
    seg_ref:   (G*D, G)  0/1 segment-sum matrix (lane l belongs to group l // D)
    segt_ref:  (G, G*D)  transpose: broadcast per-group scalars back to lanes
    gamma_ref: (1, G*D)  a_2 tiled G times (f32, VMEM-resident)
    beta_ref:  (1, G*D)  b_2 tiled G times (f32, VMEM-resident)
    """
    x = x_ref[...].astype(jnp.float32)
    seg = seg_ref[...]
    segt = segt_ref[...]
    # One pass over the data: both moments as per-group segment sums (MXU).
    s1 = jnp.dot(x, seg, preferred_element_type=jnp.float32)        # (T, G)
    s2 = jnp.dot(x * x, seg, preferred_element_type=jnp.float32)    # (T, G)
    n = float(n_features)
    mean = s1 * (1.0 / n)
    # torch.Tensor.std(): unbiased (n-1); clamp for numerical safety.
    var = jnp.maximum((s2 - s1 * mean) * (1.0 / (n - 1.0)), 0.0)
    inv = _recip(jnp.sqrt(var) + eps)                               # (T, G)
    # Broadcast per-group scalars back across their D lanes.
    mean_b = jnp.dot(mean, segt, preferred_element_type=jnp.float32)
    inv_b = jnp.dot(inv, segt, preferred_element_type=jnp.float32)
    y = gamma_ref[...] * ((x - mean_b) * inv_b) + beta_ref[...]
    o_ref[...] = y.astype(o_ref.dtype)


def _ln_plain_kernel(x_ref, gamma_ref, beta_ref, o_ref, *, eps, n_features):
    """LayerNorm over the last dim of a (T, D) block (fallback path)."""
    x = x_ref[...].astype(jnp.float32)
    s1 = jnp.sum(x, axis=-1, keepdims=True)
    s2 = jnp.sum(x * x, axis=-1, keepdims=True)
    n = float(n_features)
    mean = s1 * (1.0 / n)
    var = jnp.maximum((s2 - s1 * mean) * (1.0 / (n - 1.0)), 0.0)
    inv = _recip(jnp.sqrt(var) + eps)
    y = gamma_ref[...] * ((x - mean) * inv) + beta_ref[...]
    o_ref[...] = y.astype(o_ref.dtype)


def _choose_block_rows(n_rows, d_eff, itemsize, target_bytes=4 << 20):
    """Row-block size: ~target_bytes per input block, multiple of 8 sublanes,
    and at least ~4 blocks (when possible) so the parallel grid axis can be
    sharded across both TensorCores on v7x."""
    if n_rows <= 8:
        return n_rows                                  # full-extent block
    t = max(8, min(n_rows, target_bytes // max(1, d_eff * itemsize)))
    if n_rows >= 32:
        t = min(t, n_rows // 4)
    t = max(8, (t // 8) * 8)
    if t >= n_rows:
        return n_rows
    return t


def layer_norm_pallas(x2d, gamma, beta, *, eps=1e-6):
    """LayerNorm over the last dim of a (n_rows, d_model) array (torch.std semantics)."""
    n_rows, d = x2d.shape
    itemsize = jnp.dtype(x2d.dtype).itemsize
    gamma_f32 = gamma.astype(jnp.float32)
    beta_f32 = beta.astype(jnp.float32)

    fold = (d < 128) and (128 % d == 0) and (n_rows % (128 // d) == 0)

    if fold:
        g = 128 // d
        d_eff = 128
        rows_eff = n_rows // g
        xf = x2d.reshape(rows_eff, d_eff)              # free reshape of trailing dims
        lane_group = jnp.arange(d_eff, dtype=jnp.int32) // d
        seg = (lane_group[:, None] == jnp.arange(g, dtype=jnp.int32)[None, :]
               ).astype(jnp.float32)                   # (128, g)
        segt = seg.T                                   # (g, 128)
        gamma_in = jnp.tile(gamma_f32, g).reshape(1, d_eff)
        beta_in = jnp.tile(beta_f32, g).reshape(1, d_eff)

        t = _choose_block_rows(rows_eff, d_eff, itemsize)
        grid = (pl.cdiv(rows_eff, t),)
        # 2x double-buffered in + out blocks + in-kernel f32 temporaries.
        vmem_limit = int(min(48 << 20, max(32 << 20, 6 * t * d_eff * 4 + (2 << 20))))

        kernel = functools.partial(_ln_folded_kernel, eps=eps, n_features=d)
        out = pl.pallas_call(
            kernel,
            out_shape=jax.ShapeDtypeStruct((rows_eff, d_eff), x2d.dtype),
            grid_spec=pltpu.PrefetchScalarGridSpec(
                num_scalar_prefetch=0,
                grid=grid,
                in_specs=[
                    pl.BlockSpec((t, d_eff), lambda i: (i, 0)),     # activations
                    pl.BlockSpec((d_eff, g), lambda i: (0, 0)),     # seg   (resident)
                    pl.BlockSpec((g, d_eff), lambda i: (0, 0)),     # seg^T (resident)
                    pl.BlockSpec((1, d_eff), lambda i: (0, 0)),     # gamma (resident)
                    pl.BlockSpec((1, d_eff), lambda i: (0, 0)),     # beta  (resident)
                ],
                out_specs=pl.BlockSpec((t, d_eff), lambda i: (i, 0)),
            ),
            compiler_params=pltpu.CompilerParams(
                dimension_semantics=("parallel",),
                vmem_limit_bytes=vmem_limit,
            ),
        )(xf, seg, segt, gamma_in, beta_in)
        return out.reshape(n_rows, d)

    # Fallback: feature dim handled as-is (masked stores if D % 128 != 0).
    t = _choose_block_rows(n_rows, d, itemsize)
    grid = (pl.cdiv(n_rows, t),)
    vmem_limit = int(min(48 << 20, max(32 << 20, 6 * t * d * 4 + (2 << 20))))

    kernel = functools.partial(_ln_plain_kernel, eps=eps, n_features=d)
    return pl.pallas_call(
        kernel,
        out_shape=jax.ShapeDtypeStruct((n_rows, d), x2d.dtype),
        grid_spec=pltpu.PrefetchScalarGridSpec(
            num_scalar_prefetch=0,
            grid=grid,
            in_specs=[
                pl.BlockSpec((t, d), lambda i: (i, 0)),
                pl.BlockSpec((1, d), lambda i: (0, 0)),
                pl.BlockSpec((1, d), lambda i: (0, 0)),
            ],
            out_specs=pl.BlockSpec((t, d), lambda i: (i, 0)),
        ),
        compiler_params=pltpu.CompilerParams(
            dimension_semantics=("parallel",),
            vmem_limit_bytes=vmem_limit,
        ),
    )(x2d, gamma_f32.reshape(1, d), beta_f32.reshape(1, d))


def encoder_forward(x, mask, gamma, beta, *, eps=1e-6, n_layers=2):
    """Pallas equivalent of Encoder.forward(x, mask).

    x:     (B, S, d_model) activations
    mask:  attention mask (unused -- EncoderLayer is not part of the spec)
    gamma: (d_model,) LayerNorm scale (a_2)
    beta:  (d_model,) LayerNorm shift (b_2)
    """
    # TODO(synk): EncoderLayer (`layer`) is not defined in the provided spec, so
    # the N-layer stack is treated as identity and `mask` is unused; once the
    # layers exist, fuse this LayerNorm into the last layer's output epilogue
    # to avoid an extra full HBM read+write of the activations.
    del mask, n_layers
    B, S, D = x.shape
    y = layer_norm_pallas(x.reshape(B * S, D), gamma, beta, eps=eps)
    return y.reshape(B, S, D)


if __name__ == "__main__":
    # Small shapes consistent with the module: batch=2, seq=8, d_model=32.
    B, S, D = 2, 8, 32
    eps = 1e-6

    key = jax.random.PRNGKey(0)
    kx, kg, kb = jax.random.split(key, 3)

    x = jax.random.normal(kx, (B, S, D), dtype=jnp.float32)
    mask = jnp.ones((B, 1, S), dtype=jnp.float32)
    # nn.Parameter inits are ones/zeros; perturb deterministically so the
    # affine part of LayerNorm is actually exercised.
    gamma = 1.0 + 0.1 * jax.random.normal(kg, (D,), dtype=jnp.float32)
    beta = 0.1 * jax.random.normal(kb, (D,), dtype=jnp.float32)

    out = encoder_forward(x, mask, gamma, beta, eps=eps)
    out = jax.block_until_ready(out)

    # Reference in plain JAX matching the torch formula exactly
    # (unbiased std, eps added to std, affine applied last).
    mean = x.mean(-1, keepdims=True)
    xc = x - mean
    std = jnp.sqrt((xc * xc).sum(-1, keepdims=True) / (D - 1))
    ref = gamma * (xc / (std + eps)) + beta

    assert out.shape == (B, S, D), out.shape
    err = float(jnp.max(jnp.abs(out - ref)))
    assert err < 1e-3, f"mismatch vs reference, max abs err = {err}"

    print("KERNEL_OK")
</pallas_src>

<mosaic_0001>
module attributes {stable_mosaic.version = 11 : i64} {
  func.func @_ln_folded_kernel(%arg0: i32, %arg1: memref<4x128xf32, #tpu.memory_space<vmem>>, %arg2: memref<128x4xf32, #tpu.memory_space<vmem>>, %arg3: memref<4x128xf32, #tpu.memory_space<vmem>>, %arg4: memref<1x128xf32, #tpu.memory_space<vmem>>, %arg5: memref<1x128xf32, #tpu.memory_space<vmem>>, %arg6: memref<4x128xf32, #tpu.memory_space<vmem>>) attributes {dimension_semantics = [#tpu.dimension_semantics<parallel>], iteration_bounds = array<i64: 1>, scalar_prefetch = 0 : i64, scratch_operands = 0 : i64, tpu.core_type = #tpu.core_type<tc>, window_params = [{transform_indices = @transform_0, window_bounds = array<i64: 4, 128>}, {pipeline_mode = #tpu.pipeline_mode<synchronous>, transform_indices = @transform_1, window_bounds = array<i64: 128, 4>}, {pipeline_mode = #tpu.pipeline_mode<synchronous>, transform_indices = @transform_2, window_bounds = array<i64: 4, 128>}, {pipeline_mode = #tpu.pipeline_mode<synchronous>, transform_indices = @transform_3, window_bounds = array<i64: 1, 128>}, {pipeline_mode = #tpu.pipeline_mode<synchronous>, transform_indices = @transform_4, window_bounds = array<i64: 1, 128>}, {transform_indices = @transform_5, window_bounds = array<i64: 4, 128>}]} {
    %c0 = arith.constant 0 : index
    %c0_0 = arith.constant 0 : index
    %0 = vector.load %arg1[%c0, %c0_0] : memref<4x128xf32, #tpu.memory_space<vmem>>, vector<4x128xf32>
    %c0_1 = arith.constant 0 : index
    %c0_2 = arith.constant 0 : index
    %1 = vector.load %arg2[%c0_1, %c0_2] : memref<128x4xf32, #tpu.memory_space<vmem>>, vector<128x4xf32>
    %c0_3 = arith.constant 0 : index
    %c0_4 = arith.constant 0 : index
    %2 = vector.load %arg3[%c0_3, %c0_4] : memref<4x128xf32, #tpu.memory_space<vmem>>, vector<4x128xf32>
    %cst = arith.constant dense<0.000000e+00> : vector<4x4xf32>
    %3 = tpu.matmul %0, %1, %cst {dimension_numbers = #tpu.dot_dimension_numbers<[1], [0], [0], [1], [0, 0, 1, 1], [], []>} : vector<4x128xf32>, vector<128x4xf32>, vector<4x4xf32> -> vector<4x4xf32>
    %4 = arith.mulf %0, %0 : vector<4x128xf32>
    %cst_5 = arith.constant dense<0.000000e+00> : vector<4x4xf32>
    %5 = tpu.matmul %4, %1, %cst_5 {dimension_numbers = #tpu.dot_dimension_numbers<[1], [0], [0], [1], [0, 0, 1, 1], [], []>} : vector<4x128xf32>, vector<128x4xf32>, vector<4x4xf32> -> vector<4x4xf32>
    %cst_6 = arith.constant 3.125000e-02 : f32
    %6 = vector.broadcast %cst_6 : f32 to vector<4x4xf32>
    %7 = arith.mulf %3, %6 : vector<4x4xf32>
    %8 = arith.mulf %3, %7 : vector<4x4xf32>
    %9 = arith.subf %5, %8 : vector<4x4xf32>
    %cst_7 = arith.constant 0.0322580636 : f32
    %10 = vector.broadcast %cst_7 : f32 to vector<4x4xf32>
    %11 = arith.mulf %9, %10 : vector<4x4xf32>
    %cst_8 = arith.constant 0.000000e+00 : f32
    %12 = vector.broadcast %cst_8 : f32 to vector<4x4xf32>
    %13 = arith.maximumf %11, %12 : vector<4x4xf32>
    %14 = math.sqrt %13 : vector<4x4xf32>
    %cst_9 = arith.constant 9.99999997E-7 : f32
    %15 = vector.broadcast %cst_9 : f32 to vector<4x4xf32>
    %16 = arith.addf %14, %15 : vector<4x4xf32>
    %17 = tpu.reciprocal %16 {approx = true} : vector<4x4xf32> -> vector<4x4xf32>
    %18 = arith.mulf %16, %17 : vector<4x4xf32>
    %cst_10 = arith.constant 2.000000e+00 : f32
    %19 = vector.broadcast %cst_10 : f32 to vector<4x4xf32>
    %20 = arith.subf %19, %18 : vector<4x4xf32>
    %21 = arith.mulf %17, %20 : vector<4x4xf32>
    %cst_11 = arith.constant dense<0.000000e+00> : vector<4x128xf32>
    %22 = tpu.matmul %7, %2, %cst_11 {dimension_numbers = #tpu.dot_dimension_numbers<[1], [0], [0], [1], [0, 0, 1, 1], [], []>} : vector<4x4xf32>, vector<4x128xf32>, vector<4x128xf32> -> vector<4x128xf32>
    %cst_12 = arith.constant dense<0.000000e+00> : vector<4x128xf32>
    %23 = tpu.matmul %21, %2, %cst_12 {dimension_numbers = #tpu.dot_dimension_numbers<[1], [0], [0], [1], [0, 0, 1, 1], [], []>} : vector<4x4xf32>, vector<4x128xf32>, vector<4x128xf32> -> vector<4x128xf32>
    %c0_13 = arith.constant 0 : index
    %c0_14 = arith.constant 0 : index
    %24 = vector.load %arg4[%c0_13, %c0_14] : memref<1x128xf32, #tpu.memory_space<vmem>>, vector<1x128xf32>
    %25 = arith.subf %0, %22 : vector<4x128xf32>
    %26 = arith.mulf %25, %23 : vector<4x128xf32>
    %27 = vector.broadcast %24 : vector<1x128xf32> to vector<4x128xf32>
    %28 = arith.mulf %27, %26 : vector<4x128xf32>
    %c0_15 = arith.constant 0 : index
    %c0_16 = arith.constant 0 : index
    %29 = vector.load %arg5[%c0_15, %c0_16] : memref<1x128xf32, #tpu.memory_space<vmem>>, vector<1x128xf32>
    %30 = vector.broadcast %29 : vector<1x128xf32> to vector<4x128xf32>
    %31 = arith.addf %28, %30 : vector<4x128xf32>
    %c0_17 = arith.constant 0 : index
    %c0_18 = arith.constant 0 : index
    %32 = vector.load %arg6[%c0_17, %c0_18] : memref<4x128xf32, #tpu.memory_space<vmem>>, vector<4x128xf32>
    tpu.vector_store %arg6[%c0_17, %c0_18], %31 {strides = array<i32>} : memref<4x128xf32, #tpu.memory_space<vmem>>, vector<4x128xf32>,
    return
  }
  func.func @transform_0(%arg0: i32) -> (i32, i32) {
    %c0_i32 = arith.constant 0 : i32
    %c0_i32_0 = arith.constant 0 : i32
    return %arg0, %c0_i32 : i32, i32
  }
  func.func @transform_1(%arg0: i32) -> (i32, i32) {
    %c0_i32 = arith.constant 0 : i32
    %c0_i32_0 = arith.constant 0 : i32
    %c0_i32_1 = arith.constant 0 : i32
    return %c0_i32, %c0_i32_0 : i32, i32
  }
  func.func @transform_2(%arg0: i32) -> (i32, i32) {
    %c0_i32 = arith.constant 0 : i32
    %c0_i32_0 = arith.constant 0 : i32
    %c0_i32_1 = arith.constant 0 : i32
    return %c0_i32, %c0_i32_0 : i32, i32
  }
  func.func @transform_3(%arg0: i32) -> (i32, i32) {
    %c0_i32 = arith.constant 0 : i32
    %c0_i32_0 = arith.constant 0 : i32
    %c0_i32_1 = arith.constant 0 : i32
    return %c0_i32, %c0_i32_0 : i32, i32
  }
  func.func @transform_4(%arg0: i32) -> (i32, i32) {
    %c0_i32 = arith.constant 0 : i32
    %c0_i32_0 = arith.constant 0 : i32
    %c0_i32_1 = arith.constant 0 : i32
    return %c0_i32, %c0_i32_0 : i32, i32
  }
  func.func @transform_5(%arg0: i32) -> (i32, i32) {
    %c0_i32 = arith.constant 0 : i32
    %c0_i32_0 = arith.constant 0 : i32
    return %arg0, %c0_i32 : i32, i32
  }
}

</mosaic_0001>

<bundles_post_ra>
// kernel: tpu_custom_call.1
= control target key start
LH: loop header
LB: loop body
LE: loop exit
PB: predicated region body
PF: predicated region fallthrough
CT: control target
= control target key end

     0   :  { %v585_v3 = vmov 0.0|0.0   ;;  %vm586_vm0 = vmmov 0   ;;  %v587_v6 = vmov 0.0   ;;  %s697_s0 = inlined_call_operand.vmem [shape: f32[4,128], index: 0, kind: input, shape index: {}]   ;;  %s698_s1 = inlined_call_operand.vmem [shape: f32[128,4], index: 1, kind: input, shape index: {}]   ;;  %s699_s2 = inlined_call_operand.vmem [shape: f32[4,128], index: 2, kind: input, shape index: {}]   ;;  %s700_s3 = inlined_call_operand.vmem [shape: f32[1,128], index: 3, kind: input, shape index: {}]   ;;  %s701_s4 = inlined_call_operand.vmem [shape: f32[1,128], index: 4, kind: input, shape index: {}]   ;;  %s702_s5 = inlined_call_operand.hbm [shape: f32[4,128], index: 5, kind: output, shape index: {}]  }
   0x1   :  { %v22_v0 = vld [vmem:[%s698_s1] sm:$0xff]  ;;  %v23_v1 = vld [vmem:[%s698_s1 + $0x8] sm:$0xff]  ;;  %v24_v2 = vld [vmem:[%s698_s1 + $0x10] sm:$0xff]  ;;  %505 = vmatprep.subr.bf16.mxu0 %v585_v3  ;;  %529 = vmatprep.subr.bf16.mxu1 %v585_v3 }
   0x2   :  { %v506_v4 = vpack.c.bf16 %v23_v1, %v22_v0  ;;  %v25_v5 = vld [vmem:[%s698_s1 + $0x18] sm:$0xff]  ;;  %457 = vmatprep.mubr.msk.f32.mxu0 %vm586_vm0, %v587_v6  ;;  %492 = vmatprep.mubr.msk.f32.mxu1 %vm586_vm0, %v587_v6  ;;  %v26_v8 = vld [vmem:[%s698_s1 + $0x20] sm:$0xff]  ;;  %v27_v9 = vld [vmem:[%s698_s1 + $0x28] sm:$0xff] }
   0x3   :  { %v509_v7 = vpack.c.bf16 %v25_v5, %v24_v2 }
   0x4   :  { %507 = vmatpush3.bf16.msra.mxu0 %v506_v4  ;;  %531 = vmatpush3.bf16.msra.mxu1 %v506_v4 }
   0x5   :  { %508 = vmatprep.subr.bf16.mxu0 %v585_v3  ;;  %532 = vmatprep.subr.bf16.mxu1 %v585_v3 }
   0x6   :  { %10 = vsyncpa [#allocation3], 0  ;;  %v512_v10 = vpack.c.bf16 %v27_v9, %v26_v8  ;;  %v28_v11 = vld [vmem:[%s698_s1 + $0x30] sm:$0xff]  ;;  %v29_v12 = vld [vmem:[%s698_s1 + $0x38] sm:$0xff]  ;;  %vm201_vm1 = vcmask 1043456   ;;  %vm197_vm2 = vcmask 31744  }
   0x7   :  { %v515_v13 = vpack.c.bf16 %v29_v12, %v28_v11  ;;  %v30_v14 = vld [vmem:[%s698_s1 + $0x40] sm:$0xff]  ;;  %v31_v15 = vld [vmem:[%s698_s1 + $0x48] sm:$0xff]  ;;  %v32_v17 = vld [vmem:[%s698_s1 + $0x50] sm:$0xff]  ;;  %s588_s30 = smov [#allocation2]  }
   0x8   :  { %510 = vmatpush3.bf16.msra.mxu0 %v509_v7  ;;  %534 = vmatpush3.bf16.msra.mxu1 %v509_v7  ;;  %v518_v16 = vpack.c.bf16 %v31_v15, %v30_v14  ;;  %v33_v18 = vld [vmem:[%s698_s1 + $0x58] sm:$0xff]  ;;  %v34_v20 = vld [vmem:[%s698_s1 + $0x60] sm:$0xff]  ;;  %v35_v21 = vld [vmem:[%s698_s1 + $0x68] sm:$0xff]  ;;  %s373_s6 = sshll.u32 %s588_s30, 4  ;;  %s374_s6 = int_to_ptr.vmem [resolvable:$true] %s373_s6 }
   0x9   :  { %511 = vmatprep.subr.bf16.mxu0 %v585_v3  ;;  %535 = vmatprep.subr.bf16.mxu1 %v585_v3  ;;  %v521_v19 = vpack.c.bf16 %v33_v18, %v32_v17  ;;  %v524_v22 = vpack.c.bf16 %v35_v21, %v34_v20  ;;  %v36_v23 = vld [vmem:[%s698_s1 + $0x70] sm:$0xff]  ;;  %v37_v24 = vld [vmem:[%s698_s1 + $0x78] sm:$0xff]  ;;  %v21_v26 = vld [vmem:[%s697_s0] sm:$0xf]  ;;  %s561_s7 = scalar_lea.vmem %s374_s6, 64  ;;  %p566_p1 = scmp.lt.s32.totalorder %s374_s6, %s374_s6 }
   0xa   :  { %v527_v25 = vpack.c.bf16 %v37_v24, %v36_v23  ;;  %v109_v27 = vmul.f32 %v21_v26, %v21_v26  ;;  %v38_v28 = vld [vmem:[%s699_s2] sm:$0xf]  ;;  %p562_p0 = scmp.ne.s32.totalorder %s374_s6, %s561_s7  ;;  %p567_p2 = scmp.lt.s32.totalorder %s561_s7, %s561_s7 }
   0xb   :  { %v385_v52 = vld [vmem:[%s700_s3] ss:$0 sm:$0xff] }
   0xc   :  { %513 = vmatpush3.bf16.msra.mxu0 %v512_v10  ;;  %537 = vmatpush3.bf16.msra.mxu1 %v512_v10  ;;  %v386_v55 = vld [vmem:[%s701_s4] ss:$0 sm:$0xff]  ;;  %p568_p3 = por %p567_p2, %p566_p1 }
   0xd   :  { %514 = vmatprep.subr.bf16.mxu0 %v585_v3  ;;  %538 = vmatprep.subr.bf16.mxu1 %v585_v3 }
   0xe   :  { %p569_p4 = pnand %p568_p3, %p562_p0 }
  0x10   :  { %516 = vmatpush3.bf16.msra.mxu0 %v515_v13  ;;  %540 = vmatpush3.bf16.msra.mxu1 %v515_v13 }
  0x11   :  { %517 = vmatprep.subr.bf16.mxu0 %v585_v3  ;;  %541 = vmatprep.subr.bf16.mxu1 %v585_v3 }
  0x14   :  { %519 = vmatpush3.bf16.msra.mxu0 %v518_v16  ;;  %543 = vmatpush3.bf16.msra.mxu1 %v518_v16 }
  0x15   :  { %520 = vmatprep.subr.bf16.mxu0 %v585_v3  ;;  %544 = vmatprep.subr.bf16.mxu1 %v585_v3 }
  0x18   :  { %522 = vmatpush3.bf16.msra.mxu0 %v521_v19  ;;  %546 = vmatpush3.bf16.msra.mxu1 %v521_v19 }
  0x19   :  { %523 = vmatprep.subr.bf16.mxu0 %v585_v3  ;;  %547 = vmatprep.subr.bf16.mxu1 %v585_v3 }
  0x1c   :  { %525 = vmatpush3.bf16.msra.mxu0 %v524_v22  ;;  %549 = vmatpush3.bf16.msra.mxu1 %v524_v22 }
  0x1d   :  { %526 = vmatprep.subr.bf16.mxu0 %v585_v3  ;;  %550 = vmatprep.subr.bf16.mxu1 %v585_v3 }
  0x20   :  { %528 = vmatpush3.bf16.msra.mxu0 %v527_v25  ;;  %552 = vmatpush3.bf16.msra.mxu1 %v527_v25 }
  0x21   :  { %495 = vmatprep.subr.mxu0 %v587_v6  ;;  %500 = vmatprep.subr.mxu1 %v587_v6 }
  0x23   :  { %458 = vmatmul.mubr.f32.vlgmr.msra.gmra.mrb[0].mxu0 %v21_v26  ;;  %493 = vmatmul.mubr.f32.vlgmr.msra.gmra.mrb[0].mxu1 %v109_v27 }
  0x24   :  { %497 = vmatprep.mubr.msk.f32.mxu0 %vm586_vm0, %v587_v6  ;;  %502 = vmatprep.mubr.msk.f32.mxu1 %vm586_vm0, %v587_v6 }
  0x25   :  { %496 = vmatpush3.msk.msra.mxu0 %vm201_vm1, %v38_v28  ;;  %501 = vmatpush3.msk.msra.mxu1 %vm201_vm1, %v38_v28 }
  0xf6   :  { %v105_v29 = vpop.f32.mrb[0].mxu0  ;;  %v176_v30 = vpop.f32.mrb[0].mxu1 }
  0xf7   :  { %v180_v31 = vmul.f32 0.03125, %v105_v29  ;;  %v459_v32 = vpop.f32.mrb[1].mxu0  ;;  %v494_v33 = vpop.f32.mrb[1].mxu1 }
  0xf9   :  { %v181_v34 = vmul.f32 %v180_v31, %v105_v29  ;;  %498 = vmatmul.mubr.msk.f32.vlgmr.msra.gmra.mrb[2].mxu0 %vm197_vm2, %v180_v31 }
  0xfb   :  { %v182_v35 = vsub.f32 %v176_v30, %v181_v34 }
  0xfd   :  { %v183_v36 = vmul.f32 0.032258064, %v182_v35 }
  0xff   :  { %v184_v37 = vmax.f32 %v183_v36, 0.0 }
 0x101   :  { %557 = vrsqrt.f32 %v184_v37  ;;  %vm187_vm3 = vcmp.eq.f32.partialorder %v184_v37, inf  ;;  %v190_v40 = vand.u32 2147483648, %v184_v37  ;;  %vm189_vm4 = vcmp.eq.f32.partialorder %v184_v37, 0.0 }
 0x10b   :  { %v558_v38 = vpop.eup %557 }
 0x10c   :  { %v186_v39 = vmul.f32 %v558_v38, %v184_v37 }
 0x10e   :  { %v188_v41 = vsel %vm187_vm3, %v184_v37, %v186_v39 }
 0x10f   :  { %v191_v42 = vsel %vm189_vm4, %v190_v40, %v188_v41 }
 0x110   :  { %v192_v43 = vadd.f32 1e-06, %v191_v42 }
 0x112   :  { %559 = vrcp.f32 %v192_v43 }
 0x11c   :  { %v560_v44 = vpop.eup %559 }
 0x11d   :  { %v194_v45 = vmul.f32 %v560_v44, %v192_v43 }
 0x11f   :  { %v195_v46 = vsub.f32 2.0, %v194_v45 }
 0x121   :  { %v196_v47 = vmul.f32 %v560_v44, %v195_v46 }
 0x123   :  { %503 = vmatmul.mubr.msk.f32.vlgmr.msra.gmra.mrb[2].mxu1 %vm197_vm2, %v196_v47 }
 0x1cc   :  { %v271_v48 = vpop.f32.mrb[2].mxu0 }
 0x1cd   :  { %v499_v49 = vpop.f32.mrb[3].mxu0  ;;  %v349_v50 = vsub.f32 %v21_v26, %v271_v48 }
 0x1f6   :  { %v344_v51 = vpop.f32.mrb[2].mxu1 }
 0x1f7   :  { %v350_v53 = vmul.f32 %v349_v50, %v344_v51  ;;  %v504_v54 = vpop.f32.mrb[3].mxu1 }
 0x1f9   :  { %v357_v56 = vmul.f32 %v385_v52, %v350_v53 }
 0x1fb   :  { %v365_v57 = vadd.f32 %v386_v55, %v357_v56 }
 0x1fd   :  { %366 = vst [vmem:[#allocation2] sm:$0xf] %v365_v57 }
 0x1fe   :  { %572 = shalt.err (!%p569_p4)
}
 0x1ff   :  { %s573_s9 = scalar_lea.hbm %s702_s5, 64 }
 0x200   :  { %p574_p5 = scmp.ne.s32.totalorder %s702_s5, %s573_s9  ;;  %p577_p6 = scmp.lt.u32.totalorder %s573_s9, %s702_s5 }
 0x202   :  { %p579_p7 = pnand %p577_p6, %p574_p5 }
 0x204   :  { %582 = shalt.err (!%p579_p7)
}
 0x205   :  { %376 = dma.vmem_to_hbm [thread:$0]  %s374_s6, 64, %s702_s5, [#allocation3]  }
 0x206   :  { %583 = dma.done.wait [#allocation3], 64  }
 0x207   :  { %584 = vsyncadd [#allocation3], 4294967232 }
 0x208   :  { %380 = vsyncpa [#allocation3], 1 }

</bundles_post_ra>
